<compile_context>
chip_gen: v5e
topology: v5e:2x2
jax: 0.10.0
libtpu: 0.0.40
codegen_flags: <defaults>
</compile_context>

<pallas_src>
import functools

import jax
import jax.numpy as jnp
from jax.experimental import pallas as pl
from jax.experimental.pallas import tpu as pltpu


def attention_kernel(x_ref, w_ref, b_ref, wm_ref, attn_ref):
    """One grid step processes TB batch rows.

    x_ref:    (TB, S, D) VMEM input tile (native dtype, never upcast whole)
    w_ref:    (1, D)     lane-dense linear weight (f32, shared across steps)
    b_ref:    (1,)       linear bias scalar in SMEM (f32)
    wm_ref:   (TB, D)    weighted-mean output tile (lane-dense)
    attn_ref: (TB, S)    attention-weights output tile (lane-dense)
    """
    x = x_ref[...]                                     # (TB, S, D) native dtype
    w = w_ref[...].astype(x.dtype)                     # (1, D) downcast weight
    bias = b_ref[0]                                    # f32 scalar from SMEM

    # scores = <x, w> + b : VPU multiply in the input dtype + lane reduce with
    # f32 accumulation (no standalone full-tile f32 copy of x).
    # NOTE: the bias is mathematically a no-op under the softmax (shift
    # invariant) but is kept for 1:1 fidelity with nn.Linear(D, 1); it costs
    # only TB*S adds on an HBM-bound kernel.
    scores = jnp.sum(x * w, axis=-1, dtype=jnp.float32) + bias   # (TB, S)

    # Numerically stable softmax over the sequence (lane) axis.
    m = jnp.max(scores, axis=-1, keepdims=True)        # (TB, 1)
    e = jnp.exp(scores - m)                            # (TB, S) f32
    denom = jnp.sum(e, axis=-1, keepdims=True)         # (TB, 1)
    # approx=True would push this to the EUP slot; kept exact so the f32
    # reference comparison stays tight (kernel is HBM-bound either way).
    attn = e * pl.reciprocal(denom, approx=False)      # (TB, S) f32

    # Weighted mean as a batched MXU contraction over S, feeding x in its
    # native dtype:  (TB, 1, S) @ (TB, S, D) -> (TB, 1, D).
    # TODO(synk): if lowering ever shows per-batch relayouts/copies here,
    # switch to the VPU form jnp.sum(attn[:, :, None] * x, axis=1).
    attn_mx = attn.astype(x.dtype)
    wm = jnp.einsum(
        "bqs,bsd->bqd", attn_mx[:, None, :], x,
        preferred_element_type=jnp.float32,
    )[:, 0, :]                                         # (TB, D) f32

    wm_ref[...] = wm.astype(wm_ref.dtype)
    attn_ref[...] = attn.astype(attn_ref.dtype)


def _choose_batch_tile(B, S, D, itemsize, *, tile_budget_bytes=8 << 20,
                       split_floor_bytes=2 << 20, target_steps=4):
    """Pick TB = batch rows per grid step.

    TB is a multiple of 8 (sublane alignment of the (TB, D)/(TB, S) output
    blocks); B does NOT need to divide TB -- Pallas masks the tail block, so
    no host-side padding pass is required.  The tile is as large as the
    budget allows (amortizes the ~0.35 us/step grid overhead near the HBM
    roofline); it is only shrunk to give >= target_steps grid steps (v7x:
    2 TensorCores x double buffering) when each step would still stream at
    least split_floor_bytes, so single-TC v5e/v6e are not penalized.
    """
    if B <= 8:
        return B                              # one step; blocks == full dims
    per_row = max(1, S * D * itemsize)
    tb = max(8, (tile_budget_bytes // per_row) // 8 * 8)
    tb = min(tb, -(-B // 8) * 8)
    rows = -(-B // target_steps)              # rows/step for target_steps
    rows = -(-rows // 8) * 8                  # round up to sublane multiple
    if rows >= 8 and rows * per_row >= split_floor_bytes:
        tb = min(tb, rows)
    return tb


@functools.partial(jax.jit, static_argnames=("batch_tile",))
def attention_layer(x, w, b, *, batch_tile=None):
    """Pallas forward of AttentionLayer.

    x: (B, S, D); w: nn.Linear(D, 1) weight (any of (D,1)/(1,D)/(D,));
    b: bias with one element.
    Returns (weighted_mean (B, D), attention_weights (B, S)).
    """
    B, S, D = x.shape
    w_row = jnp.reshape(w, (1, D)).astype(jnp.float32)    # lane-dense weight
    b_scalar = jnp.reshape(b, (1,)).astype(jnp.float32)   # SMEM scalar

    TB = batch_tile if batch_tile is not None else _choose_batch_tile(
        B, S, D, x.dtype.itemsize)
    grid = (pl.cdiv(B, TB),)

    # Scoped-VMEM budget: double-buffered input tile + double-buffered output
    # tiles + one tile-sized temporary for the score multiply-reduce (f32
    # worst case for narrow input dtypes) + small f32 softmax temporaries +
    # slack.  Floor 16 MiB, cap 48 MiB (~75% of v7x's 64 MiB physical VMEM;
    # far below v5e/v6e's 128 MiB).
    itemsize = x.dtype.itemsize
    in_tile = TB * S * D * itemsize
    out_tile = TB * (D + S) * itemsize
    vmem_limit = (2 * in_tile + 2 * out_tile
                  + max(in_tile, TB * S * D * 4)
                  + 6 * TB * (S + D) * 4 + (2 << 20))
    vmem_limit = int(min(max(vmem_limit, 16 << 20), 48 << 20))

    wm, attn = pl.pallas_call(
        attention_kernel,
        out_shape=(
            jax.ShapeDtypeStruct((B, D), x.dtype),   # weighted mean
            jax.ShapeDtypeStruct((B, S), x.dtype),   # attention weights
        ),
        grid=grid,
        in_specs=[
            pl.BlockSpec((TB, S, D), lambda i: (i, 0, 0)),
            pl.BlockSpec((1, D), lambda i: (0, 0)),
            pl.BlockSpec(memory_space=pltpu.MemorySpace.SMEM),
        ],
        out_specs=(
            pl.BlockSpec((TB, D), lambda i: (i, 0)),
            pl.BlockSpec((TB, S), lambda i: (i, 0)),
        ),
        compiler_params=pltpu.CompilerParams(
            dimension_semantics=("parallel",),
            vmem_limit_bytes=vmem_limit,
        ),
    )(x, w_row, b_scalar)
    return wm, attn


if __name__ == "__main__":
    def reference(x, w, b):
        scores = jnp.einsum(
            "bsd,dk->bsk", x, w, precision=jax.lax.Precision.HIGHEST
        )[..., 0] + b.reshape(())
        attn = jax.nn.softmax(scores, axis=1)
        wm = jnp.einsum(
            "bs,bsd->bd", attn, x, precision=jax.lax.Precision.HIGHEST)
        return wm, attn

    # --- small demo shape consistent with the module: B=2, S=8, D=32 ---
    B, S, D = 2, 8, 32
    kx, kw, kb = jax.random.split(jax.random.PRNGKey(0), 3)
    bound = 1.0 / (D ** 0.5)  # nn.Linear(D, 1) default init range
    x = jax.random.normal(kx, (B, S, D), dtype=jnp.float32)
    w = jax.random.uniform(kw, (D, 1), jnp.float32, -bound, bound)
    b = jax.random.uniform(kb, (1, 1), jnp.float32, -bound, bound)

    wm, attn = attention_layer(x, w, b)
    jax.block_until_ready((wm, attn))
    wm_ref, attn_ref = reference(x, w, b)
    assert wm.shape == (B, D) and attn.shape == (B, S)
    assert jnp.allclose(wm, wm_ref, atol=1e-4, rtol=1e-4)
    assert jnp.allclose(attn, attn_ref, atol=1e-4, rtol=1e-4)

    # --- larger shape: default heuristic (single big tile, tail-masked) ---
    B2, S2, D2 = 20, 128, 256
    kx2, kw2, kb2 = jax.random.split(jax.random.PRNGKey(1), 3)
    bound2 = 1.0 / (D2 ** 0.5)
    x2 = jax.random.normal(kx2, (B2, S2, D2), dtype=jnp.float32)
    w2 = jax.random.uniform(kw2, (D2, 1), jnp.float32, -bound2, bound2)
    b2 = jax.random.uniform(kb2, (1, 1), jnp.float32, -bound2, bound2)

    wm2, attn2 = attention_layer(x2, w2, b2)
    jax.block_until_ready((wm2, attn2))
    wm2_ref, attn2_ref = reference(x2, w2, b2)
    assert wm2.shape == (B2, D2) and attn2.shape == (B2, S2)
    assert jnp.allclose(wm2, wm2_ref, atol=1e-3, rtol=1e-3)
    assert jnp.allclose(attn2, attn2_ref, atol=1e-3, rtol=1e-3)

    # --- same shape, explicit batch_tile=8: exercises the multi-step grid
    #     with a masked tail block (B=20 not divisible by 8, no padding). ---
    wm3, attn3 = attention_layer(x2, w2, b2, batch_tile=8)
    jax.block_until_ready((wm3, attn3))
    assert jnp.allclose(wm3, wm2_ref, atol=1e-3, rtol=1e-3)
    assert jnp.allclose(attn3, attn2_ref, atol=1e-3, rtol=1e-3)

    print("KERNEL_OK")
</pallas_src>

<mosaic_0001>
module attributes {stable_mosaic.version = 11 : i64} {
  func.func @attention_kernel(%arg0: i32, %arg1: memref<2x8x32xf32, #tpu.memory_space<vmem>>, %arg2: memref<1x32xf32, #tpu.memory_space<vmem>>, %arg3: memref<1xf32, #tpu.memory_space<smem>>, %arg4: memref<2x32xf32, #tpu.memory_space<vmem>>, %arg5: memref<2x8xf32, #tpu.memory_space<vmem>>) attributes {dimension_semantics = [#tpu.dimension_semantics<parallel>], iteration_bounds = array<i64: 1>, scalar_prefetch = 0 : i64, scratch_operands = 0 : i64, tpu.core_type = #tpu.core_type<tc>, window_params = [{transform_indices = @transform_0, window_bounds = array<i64: 2, 8, 32>}, {pipeline_mode = #tpu.pipeline_mode<synchronous>, transform_indices = @transform_1, window_bounds = array<i64: 1, 32>}, {transform_indices = @transform_2, window_bounds = array<i64: 1>}, {transform_indices = @transform_3, window_bounds = array<i64: 2, 32>}, {transform_indices = @transform_4, window_bounds = array<i64: 2, 8>}]} {
    %c0 = arith.constant 0 : index
    %c0_0 = arith.constant 0 : index
    %c0_1 = arith.constant 0 : index
    %0 = vector.load %arg1[%c0, %c0_0, %c0_1] : memref<2x8x32xf32, #tpu.memory_space<vmem>>, vector<2x8x32xf32>
    %c0_2 = arith.constant 0 : index
    %c0_3 = arith.constant 0 : index
    %1 = vector.load %arg2[%c0_2, %c0_3] : memref<1x32xf32, #tpu.memory_space<vmem>>, vector<1x32xf32>
    %c0_4 = arith.constant 0 : index
    %2 = memref.load %arg3[%c0_4] : memref<1xf32, #tpu.memory_space<smem>>
    %3 = vector.shape_cast %1 : vector<1x32xf32> to vector<1x1x32xf32>
    %4 = vector.broadcast %3 : vector<1x1x32xf32> to vector<2x8x32xf32>
    %5 = arith.mulf %0, %4 : vector<2x8x32xf32>
    %cst = arith.constant dense<0.000000e+00> : vector<2x8xf32>
    %6 = vector.multi_reduction <add>, %5, %cst [2] : vector<2x8x32xf32> to vector<2x8xf32>
    %7 = vector.broadcast %2 : f32 to vector<2x8xf32>
    %8 = arith.addf %6, %7 : vector<2x8xf32>
    %cst_5 = arith.constant dense<0xFF800000> : vector<2xf32>
    %9 = vector.multi_reduction <maximumf>, %8, %cst_5 [1] : vector<2x8xf32> to vector<2xf32>
    %10 = vector.shape_cast %9 : vector<2xf32> to vector<2x1xf32>
    %11 = vector.broadcast %10 : vector<2x1xf32> to vector<2x8xf32>
    %12 = arith.subf %8, %11 : vector<2x8xf32>
    %13 = math.exp %12 : vector<2x8xf32>
    %cst_6 = arith.constant dense<0.000000e+00> : vector<2xf32>
    %14 = vector.multi_reduction <add>, %13, %cst_6 [1] : vector<2x8xf32> to vector<2xf32>
    %15 = vector.shape_cast %14 : vector<2xf32> to vector<2x1xf32>
    %16 = tpu.reciprocal %15 : vector<2x1xf32> -> vector<2x1xf32>
    %17 = vector.broadcast %16 : vector<2x1xf32> to vector<2x8xf32>
    %18 = arith.mulf %13, %17 : vector<2x8xf32>
    %19 = vector.shape_cast %18 : vector<2x8xf32> to vector<2x1x8xf32>
    "tpu.trace_start"() <{level = 10 : i32, message = "bqs,bsd->bqd"}> : () -> ()
    %cst_7 = arith.constant dense<0.000000e+00> : vector<2x1x32xf32>
    %20 = tpu.matmul %19, %0, %cst_7 {dimension_numbers = #tpu.dot_dimension_numbers<[2], [1], [1], [2], [0, 0, 0, 1, 1, 2], [0], [0]>} : vector<2x1x8xf32>, vector<2x8x32xf32>, vector<2x1x32xf32> -> vector<2x1x32xf32>
    "tpu.trace_stop"() : () -> ()
    %21 = vector.shape_cast %20 : vector<2x1x32xf32> to vector<2x32xf32>
    %c0_8 = arith.constant 0 : index
    %c0_9 = arith.constant 0 : index
    %22 = vector.load %arg4[%c0_8, %c0_9] : memref<2x32xf32, #tpu.memory_space<vmem>>, vector<2x32xf32>
    tpu.vector_store %arg4[%c0_8, %c0_9], %21 {strides = array<i32>} : memref<2x32xf32, #tpu.memory_space<vmem>>, vector<2x32xf32>,
    %c0_10 = arith.constant 0 : index
    %c0_11 = arith.constant 0 : index
    %23 = vector.load %arg5[%c0_10, %c0_11] : memref<2x8xf32, #tpu.memory_space<vmem>>, vector<2x8xf32>
    tpu.vector_store %arg5[%c0_10, %c0_11], %18 {strides = array<i32>} : memref<2x8xf32, #tpu.memory_space<vmem>>, vector<2x8xf32>,
    return
  }
  func.func @transform_0(%arg0: i32) -> (i32, i32, i32) {
    %c0_i32 = arith.constant 0 : i32
    %c0_i32_0 = arith.constant 0 : i32
    %c0_i32_1 = arith.constant 0 : i32
    return %arg0, %c0_i32, %c0_i32_0 : i32, i32, i32
  }
  func.func @transform_1(%arg0: i32) -> (i32, i32) {
    %c0_i32 = arith.constant 0 : i32
    %c0_i32_0 = arith.constant 0 : i32
    %c0_i32_1 = arith.constant 0 : i32
    return %c0_i32, %c0_i32_0 : i32, i32
  }
  func.func @transform_2(%arg0: i32) -> i32 {
    %c0_i32 = arith.constant 0 : i32
    %c0_i32_0 = arith.constant 0 : i32
    return %c0_i32 : i32
  }
  func.func @transform_3(%arg0: i32) -> (i32, i32) {
    %c0_i32 = arith.constant 0 : i32
    %c0_i32_0 = arith.constant 0 : i32
    return %arg0, %c0_i32 : i32, i32
  }
  func.func @transform_4(%arg0: i32) -> (i32, i32) {
    %c0_i32 = arith.constant 0 : i32
    %c0_i32_0 = arith.constant 0 : i32
    return %arg0, %c0_i32 : i32, i32
  }
}

</mosaic_0001>

<bundles_post_ra>
// kernel: attention_layer.1
= control target key start
LH: loop header
LB: loop body
LE: loop exit
PB: predicated region body
PF: predicated region fallthrough
CT: control target
= control target key end

     0   :  { %11 = vsyncpa [#allocation4], 0  ;;  %s361_s0 = inlined_call_operand.hbm [shape: f32[2,8,32], index: 0, kind: input, shape index: {}]   ;;  %s362_s1 = inlined_call_operand.vmem [shape: f32[1,32], index: 1, kind: input, shape index: {}]   ;;  %s363_s2 = inlined_call_operand.<no memory space> [shape: f32[1], index: 2, kind: input, shape index: {}]   ;;  %s364_s3 = inlined_call_operand.hbm [shape: f32[2,32], index: 3, kind: output, shape index: {0}]   ;;  %s365_s4 = inlined_call_operand.hbm [shape: f32[2,8], index: 4, kind: output, shape index: {1}]  }
   0x1   :  { %12 = vsyncpa [#allocation5], 0 }
   0x2   :  { %13 = vsyncpa [#allocation8], 0  ;;  %s18_s17 = sshll.u32 %s361_s0, 4  ;;  %s308_s18 = smov [#allocation3]   ;;  %s19_s17 = int_to_ptr.hbm [resolvable:$true] %s18_s17 }
   0x3   :  { %s20_s19 = sshll.u32 %s308_s18, 4  ;;  %s309_s20 = smov 128   ;;  %s21_s19 = int_to_ptr.vmem [resolvable:$true] %s20_s19 }
   0x4   :  { %s310_s21 = smov 8  }
   0x5   :  { %26 = dma.hbm_to_vmem [thread:$0]  %s19_s17, 256, %s21_s19, [#allocation4], %s309_s20, %s309_s20, %s310_s21  }
   0x6   :  { %302 = dma.done.wait [#allocation4], 256  }
   0x7   :  { %303 = vsyncadd [#allocation4], 4294967040  ;;  %v35_v0 = vld [vmem:[#allocation3] sm:$0xff]  ;;  %vm44_vm0 = vcmask 261120   ;;  %v36_v2 = vld [vmem:[#allocation3 + $0x8] sm:$0xff]  ;;  %v56_v8 = vlaneseq  ;;  %v51_v9 = vstv %s363_s2  ;;  %vm60_vm1 = vcmask 1041409  }
   0x8   :  { %v223_v1 = vld [vmem:[%s362_s1] ss:$0 sm:$0xff]  ;;  %137 = vmatpush.msra.mxu0 %v35_v0  ;;  %164 = vmatpush.msra.mxu1 %v36_v2  ;;  %vm63_vm2 = vcmask 58368   ;;  %v311_v18 = vmov 0   ;;  %vm119_vm7 = vcmask 64512   ;;  %s312_s1 = smov [#allocation7]  }
   0x9   :  { %v42_v3 = vmul.f32 %v223_v1, %v35_v0  ;;  %v43_v5 = vmul.f32 %v223_v1, %v36_v2  ;;  %v57_v10 = vand.u32 127, %v56_v8  ;;  %221 = vset.pattern.permute.xlu2 %v311_v18  ;;  %220 = vset.pattern.permute.xlu1 %v311_v18  ;;  %s195_s2 = sshll.u32 %s312_s1, 4  ;;  %s197_s27 = sshll.u32 %s365_s4, 4  ;;  %vm174_vm8 = vcmask 254976   ;;  %s196_s2 = int_to_ptr.vmem [resolvable:$true] %s195_s2  ;;  %s198_s27 = int_to_ptr.hbm [resolvable:$true] %s197_s27 }
   0xa   :  { %222 = vset.pattern.permute.xlu0 %v311_v18  ;;  %s313_s28 = smov [#allocation6]   ;;  %s186_s6 = sshll.u32 %s364_s3, 4  ;;  %s187_s6 = int_to_ptr.hbm [resolvable:$true] %s186_s6 }
   0xb   :  { %v45_v4 = vsel %vm44_vm0, %v42_v3, 0.0  ;;  %v48_v6 = vsel %vm44_vm0, %v43_v5, 0.0  ;;  %s184_s29 = sshll.u32 %s313_s28, 4  ;;  %s185_s29 = int_to_ptr.vmem [resolvable:$true] %s184_s29 }
   0xc   :  { %46 = vadd.xlane.f32.xlu0 %v45_v4 }
  0x14   :  { %49 = vadd.xlane.f32.xlu0 %v48_v6 }
  0x7f   :  { %v47_v7 = vpop.xlane.xlu0 %46 }
  0x80   :  { %v52_v11 = vadd.f32 %v51_v9, %v47_v7 }
  0x82   :  { %v58_v14 = vperm.slane %v52_v11, %v57_v10 }
  0x87   :  { %v50_v12 = vpop.xlane.xlu0 %49 }
  0x88   :  { %v53_v13 = vadd.f32 %v51_v9, %v50_v12 }
  0x8a   :  { %v59_v15 = vperm.slane %v53_v13, %v57_v10 }
  0x8c   :  { %v61_v16 = vsel %vm60_vm1, %v59_v15, %v58_v14 }
  0x8d   :  { %v64_v17 = vsel %vm63_vm2, %v61_v16, -inf }
  0x8e   :  { %65 = vmax.xlane.f32.xlu1 %v64_v17 }
 0x101   :  { %v66_v19 = vpop.xlane.xlu1 %65 }
 0x102   :  { %v68_v20 = vperm.slane %v66_v19, 0  ;;  %v69_v21 = vperm.slane %v66_v19, 1 }
 0x104   :  { %v72_v22 = vsub.f32 %v52_v11, %v68_v20  ;;  %v73_v23 = vsub.f32 %v53_v13, %v69_v21 }
 0x106   :  { %v74_v24 = vmul.f32 1.442695, %v72_v22  ;;  %v76_v25 = vmul.f32 1.442695, %v73_v23 }
 0x108   :  { %224 = vpow2.f32 %v74_v24 }
 0x109   :  { %226 = vpow2.f32 %v76_v25 }
 0x10e   :  { %v225_v26 = vpop.eup %224 }
 0x10f   :  { %v227_v27 = vpop.eup %226  ;;  %81 = vperm.xlu1 %220, %v225_v26  }
 0x110   :  { %84 = vperm.xlu2 %221, %v227_v27  }
 0x16a   :  { %v85_v28 = vpop.permute.xlu2 %84 }
 0x16b   :  { %v87_v30 = vperm.slane %v85_v28, %v57_v10 }
 0x181   :  { %v82_v29 = vpop.permute.xlu1 %81 }
 0x182   :  { %v86_v31 = vperm.slane %v82_v29, %v57_v10 }
 0x184   :  { %v88_v32 = vsel %vm60_vm1, %v87_v30, %v86_v31 }
 0x185   :  { %v90_v33 = vsel %vm63_vm2, %v88_v32, 0.0 }
 0x186   :  { %91 = vadd.xlane.f32.xlu2 %v90_v33 }
 0x1f9   :  { %v92_v34 = vpop.xlane.xlu2 %91 }
 0x1fa   :  { %228 = vrcp.f32 %v92_v34  ;;  %v104_v38 = vand.u32 2147483648, %v92_v34  ;;  %v102_v40 = vand.u32 2147483647, %v92_v34  ;;  %vm98_vm4 = vweird.f32 %v92_v34 }
 0x1fc   :  { %v105_v42 = vor.u32 1.1754944e-38, %v104_v38  ;;  %vm103_vm6 = vcmp.eq.f32.partialorder %v102_v40, 8.507059e+37 }
 0x200   :  { %v229_v35 = vpop.eup %228 }
 0x201   :  { %v94_v36 = vmul.f32 %v229_v35, %v92_v34  ;;  %vm99_vm3 = vweird.f32 %v229_v35 }
 0x202   :  { %vm100_vm5 = vmor %vm98_vm4, %vm99_vm3 }
 0x203   :  { %v95_v37 = vsub.f32 1.0, %v94_v36 }
 0x205   :  { %v96_v39 = vmul.f32 %v229_v35, %v95_v37 }
 0x207   :  { %v97_v41 = vadd.f32 %v229_v35, %v96_v39 }
 0x209   :  { %v101_v43 = vsel %vm100_vm5, %v229_v35, %v97_v41 }
 0x20a   :  { %v106_v44 = vsel %vm103_vm6, %v105_v42, %v101_v43 }
 0x20b   :  { %v109_v45 = vperm.slane %v106_v44, 1  ;;  %v108_v46 = vperm.slane %v106_v44, 0 }
 0x20d   :  { %v113_v47 = vmul.f32 %v227_v27, %v109_v45  ;;  %v112_v48 = vmul.f32 %v225_v26, %v108_v46 }
 0x20f   :  { %144 = vperm.xlu0 %222, %v113_v47   ;;  %116 = vperm.xlu1 %220, %v112_v48  }
 0x281   :  { %v145_v49 = vpop.permute.xlu0 %144  ;;  %v117_v50 = vpop.permute.xlu1 %116 }
 0x282   :  { %v146_v51 = vperm.slane %v145_v49, %v57_v10  ;;  %v118_v52 = vperm.slane %v117_v50, %v57_v10 }
 0x284   :  { %v176_v53 = vsel %vm60_vm1, %v146_v51, %v118_v52  ;;  %212 = vmatmul.msk.f32.vlgmr.msra.gmra.mxu0 %vm119_vm7, %v118_v52  ;;  %213 = vmatmul.msk.f32.vlgmr.msra.gmra.mxu1 %vm119_vm7, %v146_v51 }
 0x285   :  { %178 = vst.msk [vmem:[#allocation7] sm:$0x3] %vm63_vm2, %v176_v53 }
 0x286   :  { %200 = dma.vmem_to_hbm [thread:$0]  %s196_s2, 32, %s198_s27, [#allocation8]  }
 0x301   :  { %v166_v54 = vpop.f32.mrf.mxu1  ;;  %v139_v56 = vpop.f32.mrf.mxu0 }
 0x302   :  { %v171_v55 = vrot.slane %v166_v54, 7 }
 0x304   :  { %v172_v57 = vsel %vm60_vm1, %v171_v55, %v139_v56 }
 0x305   :  { %175 = vst.msk [vmem:[#allocation6] sm:$0x3] %vm174_vm8, %v172_v57 }
 0x306   :  { %189 = dma.vmem_to_hbm [thread:$0]  %s185_s29, 32, %s187_s6, [#allocation5]  }
 0x307   :  { %304 = dma.done.wait [#allocation5], 32  }
 0x308   :  { %305 = vsyncadd [#allocation5], 4294967264 }
 0x309   :  { %306 = dma.done.wait [#allocation8], 32  }
 0x30a   :  { %307 = vsyncadd [#allocation8], 4294967264 }
 0x30b   :  { %209 = vsyncpa [#allocation4], 1 }
 0x30c   :  { %210 = vsyncpa [#allocation5], 1 }
 0x30d   :  { %211 = vsyncpa [#allocation8], 1 }

</bundles_post_ra>
